<compile_context>
chip_gen: v6e
topology: v6e:2x2x1
jax: 0.10.0
libtpu: 0.0.40
codegen_flags: <defaults>
</compile_context>

<pallas_src>
import functools

import jax
import jax.numpy as jnp
from jax.experimental import pallas as pl
from jax.experimental.pallas import tpu as pltpu


def _rbf_kernel(x_ref, centers_ref, out_ref, *, gamma):
    # x_ref:       (TN, 1) f32   one scalar per row
    # centers_ref: (1,  C) f32   RBF centers (VMEM-resident, constant block)
    # out_ref:     (TN, C) f32
    x = x_ref[...]                         # (TN, 1)
    c = centers_ref[...]                   # (1, C)
    d = x - c                              # broadcast -> (TN, C)   (VPU)
    out_ref[...] = jnp.exp((-gamma) * (d * d))   # EUP exp, dense store


def _round_up(v, m):
    return ((v + m - 1) // m) * m


def _pick_tile_n(n, c):
    """VMEM-budgeted row-tile size (multiple of 8)."""
    try:
        vmem_cap = int(pltpu.get_tpu_info().vmem_capacity_bytes)
    except Exception:  # pragma: no cover - conservative fallback (v7x size)
        vmem_cap = 64 << 20

    # Double-buffered working-set budget: ~24 MiB on v7x (64 MiB VMEM),
    # ~48 MiB on v5e/v6e (128 MiB VMEM).
    budget = min(int(vmem_cap * 0.375), 48 << 20)

    c_vmem = _round_up(c, 128)             # VMEM lane padding of the out/centers tiles
    row_bytes = (c_vmem + 128) * 4         # per-row VMEM: out tile + (tile_n,1) x tile

    tile_n = min((8 << 20) // (c_vmem * 4),          # <= 8 MiB per output buffer
                 budget // (2 * row_bytes))          # double-buffered working set
    tile_n = max((tile_n // 8) * 8, 8)

    # Don't allocate more rows than the (8-rounded) problem size.
    tile_n = min(tile_n, _round_up(n, 8))

    # Prefer >= 8 grid steps (v7x megacore sharding + DMA pipeline depth),
    # but never shrink tiles below 1024 rows to get them.
    min_steps = 8
    if pl.cdiv(n, tile_n) < min_steps and tile_n > 1024:
        tile_n = max(1024, _round_up(pl.cdiv(n, min_steps), 8))

    working_set = 2 * tile_n * row_bytes + 2 * 8 * c_vmem * 4
    vmem_limit = min(vmem_cap, _round_up(working_set, 1 << 20) + (4 << 20))
    return tile_n, vmem_limit


def rbf_pallas(x, centers, gamma, *, tile_n=None, interpret=False):
    """x: any shape (flattened to (N,1)); centers: [C]; gamma: python float.

    Returns y: [N, C] float32 with y[n, c] = exp(-gamma * (x[n] - centers[c])**2).
    """
    # TODO(synk): gamma is baked in at trace time (python float contract); pass
    # it through SMEM instead if a traced scalar is ever required.
    x = jnp.asarray(x, jnp.float32).reshape(-1, 1)               # (N, 1)
    centers = jnp.asarray(centers, jnp.float32).reshape(1, -1)   # (1, C)
    n = x.shape[0]
    c = centers.shape[1]

    auto_tile, vmem_limit = _pick_tile_n(n, c)
    if tile_n is None:
        tile_n = auto_tile
    tile_n = max((int(tile_n) // 8) * 8, 8)

    kernel = functools.partial(_rbf_kernel, gamma=float(gamma))

    out = pl.pallas_call(
        kernel,
        out_shape=jax.ShapeDtypeStruct((n, c), jnp.float32),
        grid_spec=pltpu.PrefetchScalarGridSpec(
            num_scalar_prefetch=0,
            grid=(pl.cdiv(n, tile_n),),
            in_specs=[
                # Per-tile rows of x (last dim 1 == full array dim).
                pl.BlockSpec((tile_n, 1), lambda i: (i, 0)),
                # Centers: constant block, full last dim -> DMA'd once.
                pl.BlockSpec((1, c), lambda i: (0, 0)),
            ],
            # Full-C output block: exact (N, C) result, no padding, no slice.
            out_specs=pl.BlockSpec((tile_n, c), lambda i: (i, 0)),
        ),
        compiler_params=pltpu.CompilerParams(
            dimension_semantics=("parallel",),
            vmem_limit_bytes=int(vmem_limit)),
        interpret=interpret,
    )(x, centers)

    return out


if __name__ == "__main__":
    # Small, deterministic example consistent with the module's forward:
    #   x: (N, 1) float, centers: typical RBF grid, gamma: scalar.
    centers_np = jnp.arange(0.0, 2.0, 0.1, dtype=jnp.float32)    # 20 centers
    gamma = 10.0

    key = jax.random.PRNGKey(0)

    # Case 1: the module's documented tiny shape.
    num_rows = 8
    x = jax.random.uniform(key, (num_rows, 1), dtype=jnp.float32,
                           minval=0.0, maxval=2.0)
    y = rbf_pallas(x, centers_np, gamma)
    jax.block_until_ready(y)
    ref = jnp.exp(-gamma * jnp.square(x - centers_np[None, :]))
    assert y.shape == (num_rows, centers_np.shape[0])
    assert jnp.allclose(y, ref, atol=1e-6, rtol=1e-6), "mismatch vs reference (case 1)"

    # Case 2: multi-step grid with a partial trailing block (no padding path).
    n2 = 300
    x2 = jax.random.uniform(jax.random.PRNGKey(1), (n2, 1), dtype=jnp.float32,
                            minval=-1.0, maxval=3.0)
    y2 = rbf_pallas(x2, centers_np, gamma, tile_n=128)
    jax.block_until_ready(y2)
    ref2 = jnp.exp(-gamma * jnp.square(x2 - centers_np[None, :]))
    assert y2.shape == (n2, centers_np.shape[0])
    assert jnp.allclose(y2, ref2, atol=1e-6, rtol=1e-6), "mismatch vs reference (case 2)"

    print("KERNEL_OK")
</pallas_src>

<mosaic_0001>
module attributes {stable_mosaic.version = 11 : i64} {
  func.func @_rbf_kernel(%arg0: i32, %arg1: memref<8x1xf32, #tpu.memory_space<vmem>>, %arg2: memref<1x20xf32, #tpu.memory_space<vmem>>, %arg3: memref<8x20xf32, #tpu.memory_space<vmem>>) attributes {dimension_semantics = [#tpu.dimension_semantics<parallel>], iteration_bounds = array<i64: 1>, scalar_prefetch = 0 : i64, scratch_operands = 0 : i64, tpu.core_type = #tpu.core_type<tc>, window_params = [{transform_indices = @transform_0, window_bounds = array<i64: 8, 1>}, {pipeline_mode = #tpu.pipeline_mode<synchronous>, transform_indices = @transform_1, window_bounds = array<i64: 1, 20>}, {transform_indices = @transform_2, window_bounds = array<i64: 8, 20>}]} {
    %c0 = arith.constant 0 : index
    %c0_0 = arith.constant 0 : index
    %0 = vector.load %arg1[%c0, %c0_0] : memref<8x1xf32, #tpu.memory_space<vmem>>, vector<8x1xf32>
    %c0_1 = arith.constant 0 : index
    %c0_2 = arith.constant 0 : index
    %1 = vector.load %arg2[%c0_1, %c0_2] : memref<1x20xf32, #tpu.memory_space<vmem>>, vector<1x20xf32>
    %2 = vector.broadcast %0 : vector<8x1xf32> to vector<8x20xf32>
    %3 = vector.broadcast %1 : vector<1x20xf32> to vector<8x20xf32>
    %4 = arith.subf %2, %3 : vector<8x20xf32>
    %5 = arith.mulf %4, %4 : vector<8x20xf32>
    %cst = arith.constant -1.000000e+01 : f32
    %6 = vector.broadcast %cst : f32 to vector<8x20xf32>
    %7 = arith.mulf %6, %5 : vector<8x20xf32>
    %8 = math.exp %7 : vector<8x20xf32>
    %c0_3 = arith.constant 0 : index
    %c0_4 = arith.constant 0 : index
    %9 = vector.load %arg3[%c0_3, %c0_4] : memref<8x20xf32, #tpu.memory_space<vmem>>, vector<8x20xf32>
    tpu.vector_store %arg3[%c0_3, %c0_4], %8 {strides = array<i32>} : memref<8x20xf32, #tpu.memory_space<vmem>>, vector<8x20xf32>,
    return
  }
  func.func @transform_0(%arg0: i32) -> (i32, i32) {
    %c0_i32 = arith.constant 0 : i32
    %c0_i32_0 = arith.constant 0 : i32
    return %arg0, %c0_i32 : i32, i32
  }
  func.func @transform_1(%arg0: i32) -> (i32, i32) {
    %c0_i32 = arith.constant 0 : i32
    %c0_i32_0 = arith.constant 0 : i32
    %c0_i32_1 = arith.constant 0 : i32
    return %c0_i32, %c0_i32_0 : i32, i32
  }
  func.func @transform_2(%arg0: i32) -> (i32, i32) {
    %c0_i32 = arith.constant 0 : i32
    %c0_i32_0 = arith.constant 0 : i32
    return %arg0, %c0_i32 : i32, i32
  }
}

</mosaic_0001>

<bundles_post_ra>
// kernel: tpu_custom_call.1
= control target key start
LH: loop header
LB: loop body
LE: loop exit
PB: predicated region body
PF: predicated region fallthrough
CT: control target
= control target key end

     0   :  { %s100_s0 = inlined_call_operand.vmem [shape: f32[8,1], index: 0, kind: input, shape index: {}]   ;;  %s101_s1 = inlined_call_operand.vmem [shape: f32[1,20], index: 1, kind: input, shape index: {}]   ;;  %s102_s2 = inlined_call_operand.hbm [shape: f32[8,20], index: 2, kind: output, shape index: {}]  }
   0x1   :  { %v12_v0 = vld [vmem:[%s100_s0] sm:$0xff] }
   0x2   :  { %7 = vsyncpa [#allocation3], 0  ;;  %v74_v1 = vmov 0   ;;  %v46_v2 = vld [vmem:[%s101_s1] ss:$0 sm:$0xff]  ;;  %s75_s13 = smov [#allocation2]  }
   0x3   :  { %49 = vset.pattern.permute.xlu0 %v74_v1  ;;  %s38_s14 = sshll.u32 %s75_s13, 4  ;;  %vm30_vm0 = vcmask 162816   ;;  %s39_s14 = int_to_ptr.vmem [resolvable:$true] %s38_s14 }
   0x4   :  { %16 = vperm.xlu0 %49, %v12_v0   ;;  %s52_s0 = scalar_lea.vmem %s39_s14, 128  ;;  %p57_p1 = scmp.lt.s32.totalorder %s39_s14, %s39_s14 }
   0x5   :  { %p53_p0 = scmp.ne.s32.totalorder %s39_s14, %s52_s0  ;;  %p58_p2 = scmp.lt.s32.totalorder %s52_s0, %s52_s0 }
   0x7   :  { %p59_p3 = por %p58_p2, %p57_p1 }
   0x9   :  { %p60_p4 = pnand %p59_p3, %p53_p0 }
  0x7f   :  { %v17_v3 = vpop.permute.xlu0 %16 }
  0x80   :  { %v25_v4 = vsub.f32 %v17_v3, %v46_v2 }
  0x82   :  { %v26_v5 = vmul.f32 %v25_v4, %v25_v4 }
  0x84   :  { %v27_v6 = vmul.f32 -10.0, %v26_v5 }
  0x86   :  { %v28_v7 = vmul.f32 1.442695, %v27_v6 }
  0x88   :  { %50 = vpow2.f32 %v28_v7 }
  0x95   :  { %v51_v8 = vpop.eup %50 }
  0x96   :  { %31 = vst.msk [vmem:[#allocation2] sm:$0xff] %vm30_vm0, %v51_v8 }
  0x97   :  { %63 = shalt.err (!%p60_p4)
}
  0x98   :  { %41 = dma.vmem_to_hbm [thread:$0]  %s39_s14, 128, %s102_s2, [#allocation3]  }
  0x99   :  { %72 = dma.done.wait [#allocation3], 128  }
  0x9a   :  { %73 = vsyncadd [#allocation3], 4294967168 }
  0x9b   :  { %45 = vsyncpa [#allocation3], 1 }

</bundles_post_ra>
